<compile_context>
chip_gen: v7x
topology: tpu7x:2x2x1
jax: 0.10.0
libtpu: 0.0.40
codegen_flags: <defaults>
</compile_context>

<pallas_src>
import math

import jax
import jax.numpy as jnp
from jax.experimental import pallas as pl
from jax.experimental.pallas import tpu as pltpu


# -------------------- config (small, BERT-like) --------------------
BATCH = 2
SEQ = 8
HIDDEN = 32
NUM_HEADS = 4
HEAD_SIZE = HIDDEN // NUM_HEADS
LN_EPS = 1e-12


def make_bert_attention_kernel(B, S, H, num_heads, head_size, ln_eps):
    BS = B * S

    def kernel(x_ref, mask_ref, wqkv_ref, wo_ref, vec_ref, bias_ref, out_ref):
        x = x_ref[...]                                   # (BS, H) f32

        # Packed per-channel vectors: row0 = b_qkv (3H), rows 1..3 = bo|gamma|beta in cols [0:H].
        vec = vec_ref[...]                               # (4, 3H) f32
        b_qkv = vec[0:1, :]                              # (1, 3H)
        bo = vec[1:2, 0:H]                               # (1, H)
        gamma = vec[2:3, 0:H]                            # (1, H)
        beta = vec[3:4, 0:H]                             # (1, H)

        mask_row = mask_ref[...]                         # (1, BS), multiplicative key mask
        bias_bd = bias_ref[...]                          # (BS, BS), 0 within batch, -1e30 across

        # Fused Q/K/V projection: one (BS, H) @ (H, 3H) MXU op, bf16 operands, f32 accumulate.
        # (1/sqrt(head_size) already folded into the Q columns of wqkv / b_qkv.)
        qkv = jnp.dot(x.astype(jnp.bfloat16), wqkv_ref[...],
                      preferred_element_type=jnp.float32) + b_qkv       # (BS, 3H) f32
        qkv_bf = qkv.astype(jnp.bfloat16)

        # Per-head attention with the batch folded in (block-diagonal masking).
        # Static unroll over heads: data-independent chains let the scheduler overlap softmaxes.
        ctx_heads = []
        for h in range(num_heads):
            c = h * head_size
            qh = qkv_bf[:, c:c + head_size]                              # (BS, d)
            kh = qkv_bf[:, H + c:H + c + head_size]                      # (BS, d)
            vh = qkv_bf[:, 2 * H + c:2 * H + c + head_size]              # (BS, d)

            # q @ k^T without an explicit transpose: contract last dims directly.
            scores = jax.lax.dot_general(
                qh, kh,
                dimension_numbers=(((1,), (1,)), ((), ())),
                preferred_element_type=jnp.float32)                      # (BS, BS) f32

            # Multiplicative mask (as in the PyTorch module) + block-diagonal batch bias.
            scores = scores * mask_row + bias_bd

            # Softmax over keys (f32, max-subtracted, exact divide).
            m = jnp.max(scores, axis=-1, keepdims=True)
            e = jnp.exp(scores - m)
            denom = jnp.sum(e, axis=-1, keepdims=True)
            probs = e / denom

            ctx_heads.append(
                jnp.dot(probs.astype(jnp.bfloat16), vh,
                        preferred_element_type=jnp.float32))             # (BS, d) f32

        # Value-level head concat (no VMEM scratch round-trip).
        context = jnp.concatenate(ctx_heads, axis=1)                     # (BS, H) f32

        # BertSelfOutput: dense -> (dropout = identity) -> residual -> LayerNorm
        dense = jnp.dot(context.astype(jnp.bfloat16), wo_ref[...],
                        preferred_element_type=jnp.float32) + bo
        resid = dense + x
        mu = jnp.mean(resid, axis=-1, keepdims=True)
        var = jnp.mean((resid - mu) ** 2, axis=-1, keepdims=True)
        normed = (resid - mu) * jax.lax.rsqrt(var + ln_eps)
        out_ref[...] = (normed * gamma + beta).astype(out_ref.dtype)

    return kernel


def prepare_kernel_params(params, batch, seq):
    """One-time (init-time) fusion/packing of the module parameters for the kernel."""
    wq, bq, wk, bk, wv, bv, wo, bo, gamma, beta = params
    H = wq.shape[0]
    inv_sqrt_d = 1.0 / math.sqrt(HEAD_SIZE)

    # Fuse Q|K|V with the attention scale folded into the Q columns; bf16 for the MXU.
    w_qkv = jnp.concatenate([wq * inv_sqrt_d, wk, wv], axis=1).astype(jnp.bfloat16)  # (H, 3H)
    b_qkv = jnp.concatenate([bq * inv_sqrt_d, bk, bv], axis=1)                       # (1, 3H) f32
    wo_bf = wo.astype(jnp.bfloat16)                                                   # (H, H)

    # Pack the small per-channel vectors into one slab (one DMA instead of four).
    pad = jnp.zeros((1, 2 * H), jnp.float32)
    vec_pack = jnp.concatenate(
        [b_qkv,
         jnp.concatenate([bo, pad], axis=1),
         jnp.concatenate([gamma, pad], axis=1),
         jnp.concatenate([beta, pad], axis=1)],
        axis=0).astype(jnp.float32)                                                   # (4, 3H)

    # Block-diagonal additive bias: 0 within a batch's (S,S) block, -1e30 across batches,
    # so cross-batch keys vanish from the folded-batch softmax.
    bs = batch * seq
    grp = jnp.arange(bs) // seq
    bias_bd = jnp.where(grp[:, None] == grp[None, :], 0.0, -1e30).astype(jnp.float32)  # (BS, BS)

    return (w_qkv, wo_bf, vec_pack, bias_bd)


@jax.jit
def bert_attention(hidden_states, attention_mask, kernel_params):
    w_qkv, wo_bf, vec_pack, bias_bd = kernel_params
    B, S, H = hidden_states.shape

    x2d = hidden_states.reshape(B * S, H)                    # fold batch: 2-D activation slab
    mask_row = attention_mask.reshape(1, B * S).astype(jnp.float32)   # per-key mask, one row

    vmem = lambda: pl.BlockSpec(memory_space=pltpu.MemorySpace.VMEM)

    out2d = pl.pallas_call(
        make_bert_attention_kernel(B, S, H, NUM_HEADS, HEAD_SIZE, LN_EPS),
        out_shape=jax.ShapeDtypeStruct((B * S, H), hidden_states.dtype),
        # No grid: single invocation, all operands whole-array resident in VMEM (~40 KB total).
        in_specs=[vmem() for _ in range(6)],
        out_specs=vmem(),
    )(x2d, mask_row, w_qkv, wo_bf, vec_pack, bias_bd)

    return out2d.reshape(B, S, H)


def reference_jax(hidden_states, attention_mask, params):
    """Pure-JAX f32 reference mirroring the PyTorch forward."""
    wq, bq, wk, bk, wv, bv, wo, bo, gamma, beta = params
    B, S, H = hidden_states.shape
    d = HEAD_SIZE

    def split_heads(x):  # (B,S,H) -> (B,nh,S,d)
        return x.reshape(B, S, NUM_HEADS, d).transpose(0, 2, 1, 3)

    q = split_heads(hidden_states @ wq + bq)
    k = split_heads(hidden_states @ wk + bk)
    v = split_heads(hidden_states @ wv + bv)

    scores = jnp.einsum("bhqd,bhkd->bhqk", q, k) / math.sqrt(d)
    scores = scores * attention_mask                     # broadcast [B,1,1,S]
    probs = jax.nn.softmax(scores, axis=-1)
    ctx = jnp.einsum("bhqk,bhkd->bhqd", probs, v)
    ctx = ctx.transpose(0, 2, 1, 3).reshape(B, S, H)

    dense = ctx @ wo + bo
    resid = dense + hidden_states
    mu = jnp.mean(resid, axis=-1, keepdims=True)
    var = jnp.mean((resid - mu) ** 2, axis=-1, keepdims=True)
    return (resid - mu) / jnp.sqrt(var + LN_EPS) * gamma + beta


def init_params(key):
    keys = jax.random.split(key, 8)
    scale = 0.02
    wq = scale * jax.random.normal(keys[0], (HIDDEN, HIDDEN), jnp.float32)
    wk = scale * jax.random.normal(keys[1], (HIDDEN, HIDDEN), jnp.float32)
    wv = scale * jax.random.normal(keys[2], (HIDDEN, HIDDEN), jnp.float32)
    wo = scale * jax.random.normal(keys[3], (HIDDEN, HIDDEN), jnp.float32)
    bq = scale * jax.random.normal(keys[4], (1, HIDDEN), jnp.float32)
    bk = scale * jax.random.normal(keys[5], (1, HIDDEN), jnp.float32)
    bv = scale * jax.random.normal(keys[6], (1, HIDDEN), jnp.float32)
    bo = scale * jax.random.normal(keys[7], (1, HIDDEN), jnp.float32)
    gamma = jnp.ones((1, HIDDEN), jnp.float32)
    beta = jnp.zeros((1, HIDDEN), jnp.float32)
    return (wq, bq, wk, bk, wv, bv, wo, bo, gamma, beta)


if __name__ == "__main__":
    key = jax.random.PRNGKey(0)
    k_x, k_m, k_p = jax.random.split(key, 3)

    hidden_states = jax.random.normal(k_x, (BATCH, SEQ, HIDDEN), jnp.float32)
    # Multiplicative attention mask, shape [B, 1, 1, S] (broadcasts over heads & query rows).
    attention_mask = (jax.random.uniform(k_m, (BATCH, 1, 1, SEQ)) > 0.2).astype(jnp.float32)
    params = init_params(k_p)

    # One-time parameter fusion/packing (hoisted out of the per-call hot path).
    kernel_params = prepare_kernel_params(params, BATCH, SEQ)
    kernel_params = jax.block_until_ready(kernel_params)

    out = bert_attention(hidden_states, attention_mask, kernel_params)
    out = jax.block_until_ready(out)

    ref = reference_jax(hidden_states, attention_mask, params)
    assert out.shape == (BATCH, SEQ, HIDDEN)
    # Tolerance accounts for bf16 MXU operands (softmax / residual / LayerNorm stay in f32).
    assert jnp.allclose(out, ref, atol=1e-2, rtol=1e-2), "Pallas kernel mismatch vs reference"

    print("KERNEL_OK")
</pallas_src>

<mosaic_0001>
module attributes {stable_mosaic.version = 11 : i64} {
  func.func @kernel(%arg0: memref<16x32xf32, #tpu.memory_space<vmem>>, %arg1: memref<1x16xf32, #tpu.memory_space<vmem>>, %arg2: memref<32x96xbf16, #tpu.memory_space<vmem>>, %arg3: memref<32x32xbf16, #tpu.memory_space<vmem>>, %arg4: memref<4x96xf32, #tpu.memory_space<vmem>>, %arg5: memref<16x16xf32, #tpu.memory_space<vmem>>, %arg6: memref<16x32xf32, #tpu.memory_space<vmem>>) attributes {dimension_semantics = [], scalar_prefetch = 0 : i64, scratch_operands = 0 : i64, tpu.core_type = #tpu.core_type<tc>} {
    %c0 = arith.constant 0 : index
    %c0_0 = arith.constant 0 : index
    %0 = vector.load %arg0[%c0, %c0_0] : memref<16x32xf32, #tpu.memory_space<vmem>>, vector<16x32xf32>
    %c0_1 = arith.constant 0 : index
    %c0_2 = arith.constant 0 : index
    %1 = vector.load %arg4[%c0_1, %c0_2] : memref<4x96xf32, #tpu.memory_space<vmem>>, vector<4x96xf32>
    %2 = vector.extract_strided_slice %1 {offsets = [0, 0], sizes = [1, 96], strides = [1, 1]} : vector<4x96xf32> to vector<1x96xf32>
    %3 = vector.extract_strided_slice %1 {offsets = [1, 0], sizes = [1, 32], strides = [1, 1]} : vector<4x96xf32> to vector<1x32xf32>
    %4 = vector.extract_strided_slice %1 {offsets = [2, 0], sizes = [1, 32], strides = [1, 1]} : vector<4x96xf32> to vector<1x32xf32>
    %5 = vector.extract_strided_slice %1 {offsets = [3, 0], sizes = [1, 32], strides = [1, 1]} : vector<4x96xf32> to vector<1x32xf32>
    %c0_3 = arith.constant 0 : index
    %c0_4 = arith.constant 0 : index
    %6 = vector.load %arg1[%c0_3, %c0_4] : memref<1x16xf32, #tpu.memory_space<vmem>>, vector<1x16xf32>
    %c0_5 = arith.constant 0 : index
    %c0_6 = arith.constant 0 : index
    %7 = vector.load %arg5[%c0_5, %c0_6] : memref<16x16xf32, #tpu.memory_space<vmem>>, vector<16x16xf32>
    %8 = arith.truncf %0 : vector<16x32xf32> to vector<16x32xbf16>
    %c0_7 = arith.constant 0 : index
    %c0_8 = arith.constant 0 : index
    %9 = vector.load %arg2[%c0_7, %c0_8] : memref<32x96xbf16, #tpu.memory_space<vmem>>, vector<32x96xbf16>
    %cst = arith.constant dense<0.000000e+00> : vector<16x96xf32>
    %10 = tpu.matmul %8, %9, %cst {dimension_numbers = #tpu.dot_dimension_numbers<[1], [0], [0], [1], [0, 0, 1, 1], [], []>} : vector<16x32xbf16>, vector<32x96xbf16>, vector<16x96xf32> -> vector<16x96xf32>
    %11 = vector.broadcast %2 : vector<1x96xf32> to vector<16x96xf32>
    %12 = arith.addf %10, %11 : vector<16x96xf32>
    %13 = arith.truncf %12 : vector<16x96xf32> to vector<16x96xbf16>
    %14 = vector.extract_strided_slice %13 {offsets = [0, 0], sizes = [16, 8], strides = [1, 1]} : vector<16x96xbf16> to vector<16x8xbf16>
    %15 = vector.extract_strided_slice %13 {offsets = [0, 32], sizes = [16, 8], strides = [1, 1]} : vector<16x96xbf16> to vector<16x8xbf16>
    %16 = vector.extract_strided_slice %13 {offsets = [0, 64], sizes = [16, 8], strides = [1, 1]} : vector<16x96xbf16> to vector<16x8xbf16>
    %cst_9 = arith.constant dense<0.000000e+00> : vector<16x16xf32>
    %17 = tpu.matmul %14, %15, %cst_9 {dimension_numbers = #tpu.dot_dimension_numbers<[1], [1], [0], [0], [0, 0, 1, 0], [], []>} : vector<16x8xbf16>, vector<16x8xbf16>, vector<16x16xf32> -> vector<16x16xf32>
    %18 = vector.broadcast %6 : vector<1x16xf32> to vector<16x16xf32>
    %19 = arith.mulf %17, %18 : vector<16x16xf32>
    %20 = arith.addf %19, %7 : vector<16x16xf32>
    %cst_10 = arith.constant dense<0xFF800000> : vector<16xf32>
    %21 = vector.multi_reduction <maximumf>, %20, %cst_10 [1] : vector<16x16xf32> to vector<16xf32>
    %22 = vector.shape_cast %21 : vector<16xf32> to vector<16x1xf32>
    %23 = vector.broadcast %22 : vector<16x1xf32> to vector<16x16xf32>
    %24 = arith.subf %20, %23 : vector<16x16xf32>
    %25 = math.exp %24 : vector<16x16xf32>
    %cst_11 = arith.constant dense<0.000000e+00> : vector<16xf32>
    %26 = vector.multi_reduction <add>, %25, %cst_11 [1] : vector<16x16xf32> to vector<16xf32>
    %27 = vector.shape_cast %26 : vector<16xf32> to vector<16x1xf32>
    %28 = vector.broadcast %27 : vector<16x1xf32> to vector<16x16xf32>
    %29 = arith.divf %25, %28 : vector<16x16xf32>
    %30 = arith.truncf %29 : vector<16x16xf32> to vector<16x16xbf16>
    %cst_12 = arith.constant dense<0.000000e+00> : vector<16x8xf32>
    %31 = tpu.matmul %30, %16, %cst_12 {dimension_numbers = #tpu.dot_dimension_numbers<[1], [0], [0], [1], [0, 0, 1, 1], [], []>} : vector<16x16xbf16>, vector<16x8xbf16>, vector<16x8xf32> -> vector<16x8xf32>
    %32 = vector.extract_strided_slice %13 {offsets = [0, 8], sizes = [16, 8], strides = [1, 1]} : vector<16x96xbf16> to vector<16x8xbf16>
    %33 = vector.extract_strided_slice %13 {offsets = [0, 40], sizes = [16, 8], strides = [1, 1]} : vector<16x96xbf16> to vector<16x8xbf16>
    %34 = vector.extract_strided_slice %13 {offsets = [0, 72], sizes = [16, 8], strides = [1, 1]} : vector<16x96xbf16> to vector<16x8xbf16>
    %cst_13 = arith.constant dense<0.000000e+00> : vector<16x16xf32>
    %35 = tpu.matmul %32, %33, %cst_13 {dimension_numbers = #tpu.dot_dimension_numbers<[1], [1], [0], [0], [0, 0, 1, 0], [], []>} : vector<16x8xbf16>, vector<16x8xbf16>, vector<16x16xf32> -> vector<16x16xf32>
    %36 = vector.broadcast %6 : vector<1x16xf32> to vector<16x16xf32>
    %37 = arith.mulf %35, %36 : vector<16x16xf32>
    %38 = arith.addf %37, %7 : vector<16x16xf32>
    %cst_14 = arith.constant dense<0xFF800000> : vector<16xf32>
    %39 = vector.multi_reduction <maximumf>, %38, %cst_14 [1] : vector<16x16xf32> to vector<16xf32>
    %40 = vector.shape_cast %39 : vector<16xf32> to vector<16x1xf32>
    %41 = vector.broadcast %40 : vector<16x1xf32> to vector<16x16xf32>
    %42 = arith.subf %38, %41 : vector<16x16xf32>
    %43 = math.exp %42 : vector<16x16xf32>
    %cst_15 = arith.constant dense<0.000000e+00> : vector<16xf32>
    %44 = vector.multi_reduction <add>, %43, %cst_15 [1] : vector<16x16xf32> to vector<16xf32>
    %45 = vector.shape_cast %44 : vector<16xf32> to vector<16x1xf32>
    %46 = vector.broadcast %45 : vector<16x1xf32> to vector<16x16xf32>
    %47 = arith.divf %43, %46 : vector<16x16xf32>
    %48 = arith.truncf %47 : vector<16x16xf32> to vector<16x16xbf16>
    %cst_16 = arith.constant dense<0.000000e+00> : vector<16x8xf32>
    %49 = tpu.matmul %48, %34, %cst_16 {dimension_numbers = #tpu.dot_dimension_numbers<[1], [0], [0], [1], [0, 0, 1, 1], [], []>} : vector<16x16xbf16>, vector<16x8xbf16>, vector<16x8xf32> -> vector<16x8xf32>
    %50 = vector.extract_strided_slice %13 {offsets = [0, 16], sizes = [16, 8], strides = [1, 1]} : vector<16x96xbf16> to vector<16x8xbf16>
    %51 = vector.extract_strided_slice %13 {offsets = [0, 48], sizes = [16, 8], strides = [1, 1]} : vector<16x96xbf16> to vector<16x8xbf16>
    %52 = vector.extract_strided_slice %13 {offsets = [0, 80], sizes = [16, 8], strides = [1, 1]} : vector<16x96xbf16> to vector<16x8xbf16>
    %cst_17 = arith.constant dense<0.000000e+00> : vector<16x16xf32>
    %53 = tpu.matmul %50, %51, %cst_17 {dimension_numbers = #tpu.dot_dimension_numbers<[1], [1], [0], [0], [0, 0, 1, 0], [], []>} : vector<16x8xbf16>, vector<16x8xbf16>, vector<16x16xf32> -> vector<16x16xf32>
    %54 = vector.broadcast %6 : vector<1x16xf32> to vector<16x16xf32>
    %55 = arith.mulf %53, %54 : vector<16x16xf32>
    %56 = arith.addf %55, %7 : vector<16x16xf32>
    %cst_18 = arith.constant dense<0xFF800000> : vector<16xf32>
    %57 = vector.multi_reduction <maximumf>, %56, %cst_18 [1] : vector<16x16xf32> to vector<16xf32>
    %58 = vector.shape_cast %57 : vector<16xf32> to vector<16x1xf32>
    %59 = vector.broadcast %58 : vector<16x1xf32> to vector<16x16xf32>
    %60 = arith.subf %56, %59 : vector<16x16xf32>
    %61 = math.exp %60 : vector<16x16xf32>
    %cst_19 = arith.constant dense<0.000000e+00> : vector<16xf32>
    %62 = vector.multi_reduction <add>, %61, %cst_19 [1] : vector<16x16xf32> to vector<16xf32>
    %63 = vector.shape_cast %62 : vector<16xf32> to vector<16x1xf32>
    %64 = vector.broadcast %63 : vector<16x1xf32> to vector<16x16xf32>
    %65 = arith.divf %61, %64 : vector<16x16xf32>
    %66 = arith.truncf %65 : vector<16x16xf32> to vector<16x16xbf16>
    %cst_20 = arith.constant dense<0.000000e+00> : vector<16x8xf32>
    %67 = tpu.matmul %66, %52, %cst_20 {dimension_numbers = #tpu.dot_dimension_numbers<[1], [0], [0], [1], [0, 0, 1, 1], [], []>} : vector<16x16xbf16>, vector<16x8xbf16>, vector<16x8xf32> -> vector<16x8xf32>
    %68 = vector.extract_strided_slice %13 {offsets = [0, 24], sizes = [16, 8], strides = [1, 1]} : vector<16x96xbf16> to vector<16x8xbf16>
    %69 = vector.extract_strided_slice %13 {offsets = [0, 56], sizes = [16, 8], strides = [1, 1]} : vector<16x96xbf16> to vector<16x8xbf16>
    %70 = vector.extract_strided_slice %13 {offsets = [0, 88], sizes = [16, 8], strides = [1, 1]} : vector<16x96xbf16> to vector<16x8xbf16>
    %cst_21 = arith.constant dense<0.000000e+00> : vector<16x16xf32>
    %71 = tpu.matmul %68, %69, %cst_21 {dimension_numbers = #tpu.dot_dimension_numbers<[1], [1], [0], [0], [0, 0, 1, 0], [], []>} : vector<16x8xbf16>, vector<16x8xbf16>, vector<16x16xf32> -> vector<16x16xf32>
    %72 = vector.broadcast %6 : vector<1x16xf32> to vector<16x16xf32>
    %73 = arith.mulf %71, %72 : vector<16x16xf32>
    %74 = arith.addf %73, %7 : vector<16x16xf32>
    %cst_22 = arith.constant dense<0xFF800000> : vector<16xf32>
    %75 = vector.multi_reduction <maximumf>, %74, %cst_22 [1] : vector<16x16xf32> to vector<16xf32>
    %76 = vector.shape_cast %75 : vector<16xf32> to vector<16x1xf32>
    %77 = vector.broadcast %76 : vector<16x1xf32> to vector<16x16xf32>
    %78 = arith.subf %74, %77 : vector<16x16xf32>
    %79 = math.exp %78 : vector<16x16xf32>
    %cst_23 = arith.constant dense<0.000000e+00> : vector<16xf32>
    %80 = vector.multi_reduction <add>, %79, %cst_23 [1] : vector<16x16xf32> to vector<16xf32>
    %81 = vector.shape_cast %80 : vector<16xf32> to vector<16x1xf32>
    %82 = vector.broadcast %81 : vector<16x1xf32> to vector<16x16xf32>
    %83 = arith.divf %79, %82 : vector<16x16xf32>
    %84 = arith.truncf %83 : vector<16x16xf32> to vector<16x16xbf16>
    %cst_24 = arith.constant dense<0.000000e+00> : vector<16x8xf32>
    %85 = tpu.matmul %84, %70, %cst_24 {dimension_numbers = #tpu.dot_dimension_numbers<[1], [0], [0], [1], [0, 0, 1, 1], [], []>} : vector<16x16xbf16>, vector<16x8xbf16>, vector<16x8xf32> -> vector<16x8xf32>
    %86 = tpu.concatenate %31, %49, %67, %85 in 1 : vector<16x8xf32>, vector<16x8xf32>, vector<16x8xf32>, vector<16x8xf32> -> vector<16x32xf32>
    %87 = arith.truncf %86 : vector<16x32xf32> to vector<16x32xbf16>
    %c0_25 = arith.constant 0 : index
    %c0_26 = arith.constant 0 : index
    %88 = vector.load %arg3[%c0_25, %c0_26] : memref<32x32xbf16, #tpu.memory_space<vmem>>, vector<32x32xbf16>
    %cst_27 = arith.constant dense<0.000000e+00> : vector<16x32xf32>
    %89 = tpu.matmul %87, %88, %cst_27 {dimension_numbers = #tpu.dot_dimension_numbers<[1], [0], [0], [1], [0, 0, 1, 1], [], []>} : vector<16x32xbf16>, vector<32x32xbf16>, vector<16x32xf32> -> vector<16x32xf32>
    %90 = vector.broadcast %3 : vector<1x32xf32> to vector<16x32xf32>
    %91 = arith.addf %89, %90 : vector<16x32xf32>
    %92 = arith.addf %91, %0 : vector<16x32xf32>
    %cst_28 = arith.constant dense<0.000000e+00> : vector<16xf32>
    %93 = vector.multi_reduction <add>, %92, %cst_28 [1] : vector<16x32xf32> to vector<16xf32>
    %94 = vector.shape_cast %93 : vector<16xf32> to vector<16x1xf32>
    %cst_29 = arith.constant 3.200000e+01 : f32
    %95 = vector.broadcast %cst_29 : f32 to vector<16x1xf32>
    %96 = arith.divf %94, %95 : vector<16x1xf32>
    %97 = vector.broadcast %96 : vector<16x1xf32> to vector<16x32xf32>
    %98 = arith.subf %92, %97 : vector<16x32xf32>
    %99 = arith.mulf %98, %98 : vector<16x32xf32>
    %cst_30 = arith.constant dense<0.000000e+00> : vector<16xf32>
    %100 = vector.multi_reduction <add>, %99, %cst_30 [1] : vector<16x32xf32> to vector<16xf32>
    %101 = vector.shape_cast %100 : vector<16xf32> to vector<16x1xf32>
    %cst_31 = arith.constant 3.200000e+01 : f32
    %102 = vector.broadcast %cst_31 : f32 to vector<16x1xf32>
    %103 = arith.divf %101, %102 : vector<16x1xf32>
    %104 = vector.broadcast %96 : vector<16x1xf32> to vector<16x32xf32>
    %105 = arith.subf %92, %104 : vector<16x32xf32>
    %cst_32 = arith.constant 9.99999996E-13 : f32
    %106 = vector.broadcast %cst_32 : f32 to vector<16x1xf32>
    %107 = arith.addf %103, %106 : vector<16x1xf32>
    %108 = math.rsqrt %107 : vector<16x1xf32>
    %109 = vector.broadcast %108 : vector<16x1xf32> to vector<16x32xf32>
    %110 = arith.mulf %105, %109 : vector<16x32xf32>
    %111 = vector.broadcast %4 : vector<1x32xf32> to vector<16x32xf32>
    %112 = arith.mulf %110, %111 : vector<16x32xf32>
    %113 = vector.broadcast %5 : vector<1x32xf32> to vector<16x32xf32>
    %114 = arith.addf %112, %113 : vector<16x32xf32>
    %c0_33 = arith.constant 0 : index
    %c0_34 = arith.constant 0 : index
    %115 = vector.load %arg6[%c0_33, %c0_34] : memref<16x32xf32, #tpu.memory_space<vmem>>, vector<16x32xf32>
    tpu.vector_store %arg6[%c0_33, %c0_34], %114 {strides = array<i32>} : memref<16x32xf32, #tpu.memory_space<vmem>>, vector<16x32xf32>,
    return
  }
}

</mosaic_0001>

<bundles_post_ra>
// kernel: bert_attention.1
= control target key start
LH: loop header
LB: loop body
LE: loop exit
PB: predicated region body
PF: predicated region fallthrough
CT: control target
= control target key end

     0   :  { %11 = vsyncpa [#allocation3], 0  ;;  %s1321_s0 = inlined_call_operand.vmem [shape: f32[16,32], index: 0, kind: input, shape index: {}]   ;;  %s1322_s1 = inlined_call_operand.vmem [shape: f32[1,16], index: 1, kind: input, shape index: {}]   ;;  %s1323_s2 = inlined_call_operand.hbm [shape: bf16[32,96], index: 2, kind: input, shape index: {}]   ;;  %s1324_s3 = inlined_call_operand.hbm [shape: bf16[32,32], index: 3, kind: input, shape index: {}]   ;;  %s1325_s4 = inlined_call_operand.hbm [shape: f32[4,96], index: 4, kind: input, shape index: {}]   ;;  %s1326_s5 = inlined_call_operand.vmem [shape: f32[16,16], index: 5, kind: input, shape index: {}]   ;;  %s1327_s6 = inlined_call_operand.hbm [shape: f32[16,32], index: 6, kind: output, shape index: {}]  }
   0x1   :  { %12 = vsyncpa [#allocation6], 0 }
   0x2   :  { %13 = vsyncpa [#allocation4], 0  ;;  %s1073_s21 = smov [#allocation5]   ;;  %s1074_s23 = smov [#allocation2]  }
   0x3   :  { %s35_s22 = sshll.u32 %s1073_s21, 4  ;;  %s23_s24 = sshll.u32 %s1074_s23, 4  ;;  %s36_s22 = int_to_ptr.vmem [resolvable:$true] %s35_s22  ;;  %s1130_s24 = int_to_ptr.vmem [resolvable:$true] %s23_s24 }
   0x4   :  { %s979_s27 = scalar_lea.hbm %s1324_s3, 256 }
   0x5   :  { %p980_p0 = scmp.ne.s32.totalorder %s1324_s3, %s979_s27  ;;  %p983_p1 = scmp.lt.u32.totalorder %s979_s27, %s1324_s3 }
   0x7   :  { %p985_p2 = pnand %p983_p1, %p980_p0 }
   0x9   :  { %988 = shalt.err (!%p985_p2)
}
   0xa   :  { %s989_s8 = scalar_lea.vmem %s36_s22, 256  ;;  %p994_p4 = scmp.lt.s32.totalorder %s36_s22, %s36_s22 }
   0xb   :  { %p990_p3 = scmp.ne.s32.totalorder %s36_s22, %s989_s8  ;;  %p995_p5 = scmp.lt.s32.totalorder %s989_s8, %s989_s8 }
   0xd   :  { %p996_p6 = por %p995_p5, %p994_p4 }
   0xf   :  { %p997_p7 = pnand %p996_p6, %p990_p3 }
  0x11   :  { %1000 = shalt.err (!%p997_p7)
}
  0x12   :  { %s1075_s9 = smov 64   ;;  %s1076_s10 = smov 4  }
  0x13   :  { %41 = dma.hbm_to_vmem [thread:$0]  %s1324_s3, 256, %s36_s22, [#allocation6], %s1075_s9, %s1075_s9, %s1076_s10  }
  0x14   :  { %s1001_s15 = scalar_lea.hbm %s1323_s2, 256 }
  0x15   :  { %p1002_p8 = scmp.ne.s32.totalorder %s1323_s2, %s1001_s15  ;;  %p1005_p9 = scmp.lt.u32.totalorder %s1001_s15, %s1323_s2 }
  0x17   :  { %p1007_p10 = pnand %p1005_p9, %p1002_p8 }
  0x19   :  { %1010 = shalt.err (!%p1007_p10)
}
  0x1a   :  { %s1011_s20 = scalar_lea.vmem %s1130_s24, 256  ;;  %p1016_p12 = scmp.lt.s32.totalorder %s1130_s24, %s1130_s24 }
  0x1b   :  { %p1012_p11 = scmp.ne.s32.totalorder %s1130_s24, %s1011_s20  ;;  %p1017_p13 = scmp.lt.s32.totalorder %s1011_s20, %s1011_s20 }
  0x1d   :  { %p1018_p0 = por %p1017_p13, %p1016_p12 }
  0x1f   :  { %p1019_p1 = pnand %p1018_p0, %p1012_p11 }
  0x21   :  { %1022 = shalt.err (!%p1019_p1)
}
  0x22   :  { %29 = dma.hbm_to_vmem [thread:$0]  %s1323_s2, 256, %s1130_s24, [#allocation3], %s1075_s9, %s1075_s9, %s1076_s10  }
  0x23   :  { %s1077_s22 = smov [#allocation7]   ;;  %s1023_s27 = scalar_lea.hbm %s1325_s4, 64 }
  0x24   :  { %s48_s23 = sshll.u32 %s1077_s22, 4  ;;  %p1024_p2 = scmp.ne.s32.totalorder %s1325_s4, %s1023_s27  ;;  %s49_s23 = int_to_ptr.vmem [resolvable:$true] %s48_s23 }
  0x25   :  { %p1027_p3 = scmp.lt.u32.totalorder %s1023_s27, %s1325_s4 }
  0x27   :  { %p1029_p4 = pnand %p1027_p3, %p1024_p2 }
  0x29   :  { %1032 = shalt.err (!%p1029_p4)
}
  0x2a   :  { %s1033_s8 = scalar_lea.vmem %s49_s23, 64  ;;  %p1038_p6 = scmp.lt.s32.totalorder %s49_s23, %s49_s23 }
  0x2b   :  { %p1034_p5 = scmp.ne.s32.totalorder %s49_s23, %s1033_s8  ;;  %p1039_p7 = scmp.lt.s32.totalorder %s1033_s8, %s1033_s8 }
  0x2d   :  { %p1040_p8 = por %p1039_p7, %p1038_p6 }
  0x2f   :  { %p1041_p9 = pnand %p1040_p8, %p1034_p5 }
  0x31   :  { %1044 = shalt.err (!%p1041_p9)
}
  0x32   :  { %51 = dma.hbm_to_vmem [thread:$0]  %s1325_s4, 64, %s49_s23, [#allocation6]  }
  0x33   :  { %1067 = dma.done.wait [#allocation3], 256  }
  0x34   :  { %1068 = vsyncadd [#allocation3], 4294967040 }
  0x35   :  { %1069 = dma.done.wait [#allocation6], 320  }
  0x36   :  { %1070 = vsyncadd [#allocation6], 4294966976  ;;  %v1078_v0 = vmov 0.0   ;;  %vm1079_vm0 = vmmov 0   ;;  %v939_v1 = vld [vmem:[#allocation2] sm:$0xff]   ;;  %v940_v2 = vld [vmem:[#allocation2 + $0x8] sm:$0xff]   ;;  %v75_v6 = vlaneseq }
  0x37   :  { %838 = vmatprep.subr.bf16.mxu0 %v1078_v0  ;;  %842 = vmatprep.mubr.msk.bf16.mxu0 %vm1079_vm0, %v1078_v0  ;;  %v1186_v3 = vld [vmem:[%s1321_s0] sm:$0xff]  ;;  %v1191_v4 = vld [vmem:[%s1321_s0 + $0x8] sm:$0xff]  ;;  %vm91_vm1 = vcmask 261120   ;;  %s1080_s0 = smov 120   ;;  %s1081_s13 = smov 96   ;;  %vm140_vm2 = vcmask 64512  }
  0x38   :  { %846 = vmatprep.subr.bf16.mxu1 %v1078_v0  ;;  %848 = vmatprep.mubr.msk.bf16.mxu1 %vm1079_vm0, %v1078_v0  ;;  %v70_v5 = vpack.c.bf16 %v1191_v4, %v1186_v3  ;;  %v1200_v7 = vshrl.u32 %v75_v6, 7  ;;  %v1203_v9 = vld [vmem:[#allocation7] sm:$0xf]  ;;  %s1082_s14 = smov 80   ;;  %s1083_s15 = smov 88   ;;  %vm198_vm3 = vcmask 130048  }
  0x39   :  { %839 = vmatpush3.bf16.msra.mxu0 %v939_v1  ;;  %s1084_s16 = smov 72   ;;  %s1085_s17 = smov 112   ;;  %v805_v29 = vld [vmem:[%s1322_s1] ss:$0 sm:$0xff]  ;;  %v69_v35 = vld [vmem:[%s1326_s5 + $0x8] sm:$0xff]  ;;  %vm672_vm4 = vcmask 195584  }
  0x3a   :  { %840 = vmatprep.subr.bf16.mxu0 %v1078_v0  ;;  %v77_v8 = vsub.s32 0, %v1200_v7  ;;  %s1086_s18 = smov 104   ;;  %v68_v31 = vld [vmem:[%s1326_s5] sm:$0xff]  ;;  %s1087_s1 = smov 56  }
  0x3b   :  { %s1088_s5 = smov 48   ;;  %s1090_s25 = smov 8  }
  0x3c   :  { %v78_v10 = vrot.slane %v1203_v9, %v77_v8  ;;  %s1091_s26 = smov 16   ;;  %s1092_s27 = smov 24  }
  0x3d   :  { %841 = vmatpush3.bf16.msra.mxu0 %v940_v2  ;;  %s1093_s28 = smov [#allocation8]  }
  0x3e   :  { %852 = vmatprep.subr.bf16.mxu0 %v1078_v0  ;;  %s788_s29 = sshll.u32 %s1093_s28, 4  ;;  %s789_s29 = int_to_ptr.vmem [resolvable:$true] %s788_s29 }
  0x3f   :  { %s1045_s30 = scalar_lea.vmem %s789_s29, 256  ;;  %p1050_p11 = scmp.lt.s32.totalorder %s789_s29, %s789_s29 }
  0x40   :  { %843 = vmatmul.mubr.msk.bf16.vlgmr.msra.gmra.mrb[0].mxu0 %vm91_vm1, %v70_v5  ;;  %p1046_p10 = scmp.ne.s32.totalorder %s789_s29, %s1045_s30  ;;  %p1051_p12 = scmp.lt.s32.totalorder %s1045_s30, %s1045_s30 }
  0x41   :  { %854 = vmatprep.mubr.msk.bf16.mxu0 %vm1079_vm0, %v1078_v0 }
  0x42   :  { %p1052_p13 = por %p1051_p12, %p1050_p11 }
  0x44   :  { %p1053_p0 = pnand %p1052_p13, %p1046_p10 }
 0x113   :  { %v129_v11 = vpop.f32.mrb[0].mxu0 }
 0x114   :  { %v844_v12 = vpop.f32.mrb[1].mxu0  ;;  %v130_v14 = vadd.f32 %v129_v11, %v78_v10 }
 0x115   :  { %v132_v13 = vpop.f32.mrb[2].mxu0 }
 0x116   :  { %v133_v15 = vadd.f32 %v132_v13, %v78_v10  ;;  %v845_v16 = vpop.f32.mrb[3].mxu0 }
 0x118   :  { %v1206_v17 = vpack.c.bf16 %v133_v15, %v130_v14 }
 0x11a   :  { %269 = vrot.lane.b32.xlu1 %v1206_v17, %s1080_s0  ;;  %138 = vrot.lane.b32.xlu0 %v1206_v17, %s1081_s13 }
 0x11e   :  { %396 = vrot.lane.b32.xlu1 %v1206_v17, %s1082_s14  ;;  %271 = vrot.lane.b32.xlu0 %v1206_v17, %s1083_s15 }
 0x122   :  { %521 = vrot.lane.b32.xlu1 %v1206_v17, %s1084_s16  ;;  %394 = vrot.lane.b32.xlu0 %v1206_v17, %s1085_s17 }
 0x126   :  { %519 = vrot.lane.b32.xlu0 %v1206_v17, %s1086_s18 }
 0x18c   :  { %v139_v18 = vpop.permute.xlu0 %138  ;;  %v270_v21 = vpop.permute.xlu1 %269 }
 0x18d   :  { %v145_v19 = vsel %vm140_vm2, %v139_v18, 0 }
 0x18e   :  { %847 = vmatpush3.bf16.xpose.msra.mxu1 %v145_v19 }
 0x18f   :  { %858 = vmatprep.subr.bf16.mxu1 %v1078_v0 }
 0x190   :  { %v272_v20 = vpop.permute.xlu0 %271  ;;  %v397_v23 = vpop.permute.xlu1 %396 }
 0x191   :  { %v277_v22 = vsel %vm140_vm2, %v272_v20, 0  ;;  %v402_v24 = vsel %vm140_vm2, %v397_v23, 0 }
 0x194   :  { %v522_v25 = vpop.permute.xlu1 %521  ;;  %v395_v26 = vpop.permute.xlu0 %394 }
 0x195   :  { %849 = vmatmul.mubr.msk.bf16.vlgmr.msra.gmra.mrb[0].mxu1 %vm140_vm2, %v1206_v17  ;;  %v527_v27 = vsel %vm140_vm2, %v522_v25, 0 }
 0x196   :  { %859 = vmatpush3.bf16.xpose.msra.mxu1 %v277_v22  ;;  %860 = vmatprep.mubr.msk.bf16.mxu1 %vm1079_vm0, %v1078_v0 }
 0x197   :  { %870 = vmatprep.subr.bf16.mxu1 %v1078_v0 }
 0x198   :  { %v520_v28 = vpop.permute.xlu0 %519 }
 0x19d   :  { %861 = vmatmul.mubr.msk.bf16.vlgmr.msra.gmra.mrb[4].mxu1 %vm140_vm2, %v270_v21 }
 0x19e   :  { %871 = vmatpush3.bf16.xpose.msra.mxu1 %v402_v24  ;;  %872 = vmatprep.mubr.msk.bf16.mxu1 %vm1079_vm0, %v1078_v0 }
 0x19f   :  { %882 = vmatprep.subr.bf16.mxu1 %v1078_v0 }
 0x1a5   :  { %873 = vmatmul.mubr.msk.bf16.vlgmr.msra.gmra.mrb[8].mxu1 %vm140_vm2, %v395_v26 }
 0x1a6   :  { %883 = vmatpush3.bf16.xpose.msra.mxu1 %v527_v27  ;;  %884 = vmatprep.mubr.msk.bf16.mxu1 %vm1079_vm0, %v1078_v0 }
 0x1a7   :  { %894 = vmatprep.subr.bf16.mxu1 %v1078_v0 }
 0x1ad   :  { %885 = vmatmul.mubr.msk.bf16.vlgmr.msra.gmra.mrb[12].mxu1 %vm140_vm2, %v520_v28 }
 0x1ae   :  { %898 = vmatprep.mubr.msk.bf16.mxu1 %vm1079_vm0, %v1078_v0 }
 0x268   :  { %v181_v30 = vpop.f32.mrb[0].mxu1 }
 0x269   :  { %v194_v32 = vmul.f32 %v805_v29, %v181_v30  ;;  %v850_v33 = vpop.f32.mrb[1].mxu1 }
 0x26a   :  { %v184_v34 = vpop.f32.mrb[2].mxu1 }
 0x26b   :  { %v195_v36 = vmul.f32 %v805_v29, %v184_v34  ;;  %v851_v37 = vpop.f32.mrb[3].mxu1  ;;  %v196_v38 = vadd.f32 %v194_v32, %v68_v31 }
 0x26d   :  { %v199_v39 = vsel %vm198_vm3, %v196_v38, -inf  ;;  %v197_v40 = vadd.f32 %v195_v36, %v69_v35 }
 0x26e   :  { %200 = vmax.xlane.f32.xlu1 %v199_v39 }
 0x26f   :  { %v202_v41 = vsel %vm198_vm3, %v197_v40, -inf }
 0x270   :  { %203 = vmax.xlane.f32.xlu0 %v202_v41  ;;  %v313_v42 = vpop.f32.mrb[4].mxu1 }
 0x271   :  { %v320_v43 = vmul.f32 %v805_v29, %v313_v42  ;;  %v862_v44 = vpop.f32.mrb[5].mxu1 }
 0x272   :  { %v316_v45 = vpop.f32.mrb[6].mxu1 }
 0x273   :  { %v321_v46 = vmul.f32 %v805_v29, %v316_v45  ;;  %v863_v47 = vpop.f32.mrb[7].mxu1  ;;  %v322_v48 = vadd.f32 %v320_v43, %v68_v31 }
 0x275   :  { %v324_v49 = vsel %vm198_vm3, %v322_v48, -inf  ;;  %v323_v50 = vadd.f32 %v321_v46, %v69_v35 }
 0x276   :  { %325 = vmax.xlane.f32.xlu0 %v324_v49 }
 0x277   :  { %v327_v51 = vsel %vm198_vm3, %v323_v50, -inf }
 0x278   :  { %328 = vmax.xlane.f32.xlu1 %v327_v51  ;;  %v438_v52 = vpop.f32.mrb[8].mxu1 }
 0x279   :  { %v445_v53 = vmul.f32 %v805_v29, %v438_v52  ;;  %v874_v54 = vpop.f32.mrb[9].mxu1 }
 0x27a   :  { %v441_v55 = vpop.f32.mrb[10].mxu1 }
 0x27b   :  { %v446_v56 = vmul.f32 %v805_v29, %v441_v55  ;;  %v875_v57 = vpop.f32.mrb[11].mxu1  ;;  %v447_v58 = vadd.f32 %v445_v53, %v68_v31 }
 0x27d   :  { %v449_v59 = vsel %vm198_vm3, %v447_v58, -inf  ;;  %v448_v60 = vadd.f32 %v446_v56, %v69_v35 }
 0x27e   :  { %450 = vmax.xlane.f32.xlu0 %v449_v59 }
 0x27f   :  { %v452_v61 = vsel %vm198_vm3, %v448_v60, -inf }
 0x280   :  { %453 = vmax.xlane.f32.xlu1 %v452_v61  ;;  %v563_v62 = vpop.f32.mrb[12].mxu1 }
 0x281   :  { %v570_v63 = vmul.f32 %v805_v29, %v563_v62  ;;  %v886_v1 = vpop.f32.mrb[13].mxu1 }
 0x282   :  { %v566_v2 = vpop.f32.mrb[14].mxu1 }
 0x283   :  { %v571_v5 = vmul.f32 %v805_v29, %v566_v2  ;;  %v887_v6 = vpop.f32.mrb[15].mxu1  ;;  %v572_v8 = vadd.f32 %v570_v63, %v68_v31 }
 0x285   :  { %v574_v10 = vsel %vm198_vm3, %v572_v8, -inf  ;;  %v573_v11 = vadd.f32 %v571_v5, %v69_v35 }
 0x286   :  { %575 = vmax.xlane.f32.xlu0 %v574_v10 }
 0x287   :  { %v577_v12 = vsel %vm198_vm3, %v573_v11, -inf }
 0x288   :  { %578 = vmax.xlane.f32.xlu1 %v577_v12 }
 0x2fb   :  { %v201_v13 = vpop.xlane.xlu1 %200 }
 0x2fc   :  { %v205_v14 = vsub.f32 %v196_v38, %v201_v13 }
 0x2fd   :  { %v204_v15 = vpop.xlane.xlu0 %203 }
 0x2fe   :  { %v207_v16 = vmul.f32 1.442695, %v205_v14  ;;  %v206_v18 = vsub.f32 %v197_v40, %v204_v15 }
 0x300   :  { %943 = vpow2.f32 %v207_v16  ;;  %v209_v19 = vmul.f32 1.442695, %v206_v18 }
 0x302   :  { %945 = vpow2.f32 %v209_v19 }
 0x303   :  { %v326_v20 = vpop.xlane.xlu0 %325 }
 0x304   :  { %v330_v21 = vsub.f32 %v322_v48, %v326_v20 }
 0x305   :  { %v329_v29 = vpop.xlane.xlu1 %328 }
 0x306   :  { %v332_v22 = vmul.f32 1.442695, %v330_v21  ;;  %v331_v30 = vsub.f32 %v323_v50, %v329_v29 }
 0x308   :  { %947 = vpow2.f32 %v332_v22  ;;  %v334_v33 = vmul.f32 1.442695, %v331_v30 }
 0x30a   :  { %v944_v23 = vpop.eup %943  ;;  %949 = vpow2.f32 %v334_v33 }
 0x30b   :  { %v211_v24 = vsel %vm198_vm3, %v944_v23, 0.0  ;;  %v451_v32 = vpop.xlane.xlu0 %450 }
 0x30c   :  { %v946_v25 = vpop.eup %945  ;;  %212 = vadd.xlane.f32.xlu0 %v211_v24  ;;  %v455_v36 = vsub.f32 %v447_v58, %v451_v32 }
 0x30d   :  { %v214_v26 = vsel %vm198_vm3, %v946_v25, 0.0  ;;  %v454_v31 = vpop.xlane.xlu1 %453 }
 0x30e   :  { %215 = vadd.xlane.f32.xlu1 %v214_v26  ;;  %v456_v34 = vsub.f32 %v448_v60, %v454_v31  ;;  %v457_v40 = vmul.f32 1.442695, %v455_v36 }
 0x310   :  { %v459_v38 = vmul.f32 1.442695, %v456_v34  ;;  %v941_v34 = vld [vmem:[#allocation5] sm:$0xff]  }
 0x311   :  { %895 = vmatpush3.bf16.msra.mxu1 %v941_v34 }
 0x312   :  { %v1255_v27 = vpop.eup %947  ;;  %951 = vpow2.f32 %v459_v38  ;;  %896 = vmatprep.subr.bf16.mxu1 %v1078_v0 }
 0x313   :  { %v336_v28 = vsel %vm198_vm3, %v1255_v27, 0.0  ;;  %v576_v37 = vpop.xlane.xlu0 %575  ;;  %953 = vpow2.f32 %v457_v40 }
 0x314   :  { %337 = vadd.xlane.f32.xlu0 %v336_v28  ;;  %v580_v41 = vsub.f32 %v572_v8, %v576_v37  ;;  %v950_v44 = vpop.eup %949 }
 0x315   :  { %v579_v35 = vpop.xlane.xlu1 %578  ;;  %v339_v45 = vsel %vm198_vm3, %v950_v44, 0.0 }
 0x316   :  { %v581_v39 = vsub.f32 %v573_v11, %v579_v35  ;;  %v582_v43 = vmul.f32 1.442695, %v580_v41 }
 0x318   :  { %v584_v42 = vmul.f32 1.442695, %v581_v39  ;;  %v942_v39 = vld [vmem:[#allocation5 + $0x8] sm:$0xff]  }
 0x319   :  { %897 = vmatpush3.bf16.msra.mxu1 %v942_v39 }
 0x31a   :  { %955 = vpow2.f32 %v584_v42 }
 0x31b   :  { %957 = vpow2.f32 %v582_v43 }
 0x31c   :  { %v952_v46 = vpop.eup %951 }
 0x31d   :  { %v954_v47 = vpop.eup %953  ;;  %v464_v48 = vsel %vm198_vm3, %v952_v46, 0.0 }
 0x31e   :  { %v461_v50 = vsel %vm198_vm3, %v954_v47, 0.0 }
 0x31f   :  { %347 = vrot.lane.b32.xlu1 %v1206_v17, %s1087_s1 }
 0x324   :  { %v1264_v49 = vpop.eup %955 }
 0x325   :  { %v958_v51 = vpop.eup %957  ;;  %v589_v52 = vsel %vm198_vm3, %v1264_v49, 0.0 }
 0x326   :  { %v586_v53 = vsel %vm198_vm3, %v958_v51, 0.0 }
 0x32a   :  { %222 = vrot.lane.b32.xlu0 %v1206_v17, %s1075_s9  ;;  %s1089_s9 = smov 40  }
 0x343   :  { %340 = vadd.xlane.f32.xlu1 %v339_v45 }
 0x347   :  { %465 = vadd.xlane.f32.xlu1 %v464_v48 }
 0x349   :  { %462 = vadd.xlane.f32.xlu0 %v461_v50 }
 0x34b   :  { %590 = vadd.xlane.f32.xlu1 %v589_v52 }
 0x34d   :  { %587 = vadd.xlane.f32.xlu0 %v586_v53 }
 0x35c   :  { %472 = vrot.lane.b32.xlu1 %v1206_v17, %s1088_s5 }
 0x363   :  { %597 = vrot.lane.b32.xlu0 %v1206_v17, %s1089_s9 }
 0x399   :  { %v213_v54 = vpop.xlane.xlu0 %212 }
 0x39a   :  { %959 = vrcp.f32 %v213_v54 }
 0x39b   :  { %v216_v55 = vpop.xlane.xlu1 %215 }
 0x39c   :  { %961 = vrcp.f32 %v216_v55 }
 0x39f   :  { %v348_v63 = vpop.permute.xlu1 %347 }
 0x3a1   :  { %v338_v56 = vpop.xlane.xlu0 %337 }
 0x3a2   :  { %963 = vrcp.f32 %v338_v56 }
 0x3a4   :  { %v960_v57 = vpop.eup %959 }
 0x3a5   :  { %v223_v58 = vpop.permute.xlu0 %222  ;;  %v218_v60 = vmul.f32 %v960_v57, %v944_v23 }
 0x3a6   :  { %v962_v59 = vpop.eup %961  ;;  %853 = vmatpush3.bf16.msra.mxu0 %v223_v58 }
 0x3a7   :  { %v220_v61 = vmul.f32 %v962_v59, %v946_v25  ;;  %864 = vmatprep.subr.bf16.mxu0 %v1078_v0 }
 0x3a9   :  { %v221_v62 = vpack.c.bf16 %v220_v61, %v218_v60 }
 0x3ab   :  { %855 = vmatmul.mubr.msk.bf16.vlgmr.msra.gmra.mrb[4].mxu0 %vm198_vm3, %v221_v62 }
 0x3ac   :  { %865 = vmatpush3.bf16.msra.mxu0 %v348_v63  ;;  %866 = vmatprep.mubr.msk.bf16.mxu0 %vm1079_vm0, %v1078_v0  ;;  %v964_v5 = vpop.eup %963  ;;  %v682_v63 = vsub.s32 1, %v1200_v7 }
 0x3ad   :  { %876 = vmatprep.subr.bf16.mxu0 %v1078_v0  ;;  %v343_v11 = vmul.f32 %v964_v5, %v1255_v27 }
 0x3d0   :  { %v341_v17 = vpop.xlane.xlu1 %340 }
 0x3d1   :  { %965 = vrcp.f32 %v341_v17  ;;  %v683_v17 = vrot.slane %v1203_v9, %v682_v63 }
 0x3d4   :  { %v466_v1 = vpop.xlane.xlu1 %465 }
 0x3d5   :  { %967 = vrcp.f32 %v466_v1 }
 0x3d6   :  { %v463_v2 = vpop.xlane.xlu0 %462 }
 0x3d7   :  { %969 = vrcp.f32 %v463_v2 }
 0x3d8   :  { %v591_v6 = vpop.xlane.xlu1 %590 }
 0x3da   :  { %v588_v8 = vpop.xlane.xlu0 %587 }
 0x3db   :  { %v966_v10 = vpop.eup %965  ;;  %971 = vrcp.f32 %v588_v8 }
 0x3dc   :  { %v345_v12 = vmul.f32 %v966_v10, %v950_v44  ;;  %973 = vrcp.f32 %v591_v6  ;;  %v473_v15 = vpop.permute.xlu1 %472 }
 0x3de   :  { %v346_v13 = vpack.c.bf16 %v345_v12, %v343_v11  ;;  %v598_v22 = vpop.permute.xlu0 %597 }
 0x3df   :  { %v968_v14 = vpop.eup %967 }
 0x3e0   :  { %867 = vmatmul.mubr.msk.bf16.vlgmr.msra.gmra.mrb[8].mxu0 %vm198_vm3, %v346_v13  ;;  %v470_v19 = vmul.f32 %v968_v14, %v952_v46 }
 0x3e1   :  { %v970_v16 = vpop.eup %969  ;;  %877 = vmatpush3.bf16.msra.mxu0 %v473_v15  ;;  %878 = vmatprep.mubr.msk.bf16.mxu0 %vm1079_vm0, %v1078_v0 }
 0x3e2   :  { %v468_v18 = vmul.f32 %v970_v16, %v954_v47  ;;  %888 = vmatprep.subr.bf16.mxu0 %v1078_v0 }
 0x3e4   :  { %v471_v20 = vpack.c.bf16 %v470_v19, %v468_v18 }
 0x3e5   :  { %v972_v21 = vpop.eup %971 }
 0x3e6   :  { %v974_v23 = vpop.eup %973  ;;  %v593_v24 = vmul.f32 %v972_v21, %v958_v51 }
 0x3e7   :  { %v595_v25 = vmul.f32 %v974_v23, %v1264_v49 }
 0x3e8   :  { %879 = vmatmul.mubr.msk.bf16.vlgmr.msra.gmra.mrb[12].mxu0 %vm198_vm3, %v471_v20 }
 0x3e9   :  { %889 = vmatpush3.bf16.msra.mxu0 %v598_v22  ;;  %890 = vmatprep.mubr.msk.bf16.mxu0 %vm1079_vm0, %v1078_v0  ;;  %v596_v26 = vpack.c.bf16 %v595_v25, %v593_v24 }
 0x3f0   :  { %891 = vmatmul.mubr.msk.bf16.vlgmr.msra.gmra.mrb[16].mxu0 %vm198_vm3, %v596_v26 }
 0x47e   :  { %v262_v27 = vpop.f32.mrb[4].mxu0 }
 0x47f   :  { %v856_v28 = vpop.f32.mrb[5].mxu0 }
 0x480   :  { %v265_v29 = vpop.f32.mrb[6].mxu0 }
 0x481   :  { %v857_v30 = vpop.f32.mrb[7].mxu0 }
 0x482   :  { %v771_v30 = vsub.s32 2, %v1200_v7 }
 0x4b3   :  { %v387_v31 = vpop.f32.mrb[8].mxu0 }
 0x4b4   :  { %v868_v32 = vpop.f32.mrb[9].mxu0 }
 0x4b5   :  { %v390_v33 = vpop.f32.mrb[10].mxu0  ;;  %v772_v32 = vrot.slane %v1203_v9, %v771_v30 }
 0x4b6   :  { %v924_v35 = vpack.i.bf16 %v390_v33, %v387_v31  ;;  %v869_v36 = vpop.f32.mrb[11].mxu0  ;;  %v777_v31 = vsub.s32 3, %v1200_v7 }
 0x4b8   :  { %925 = vrot.lane.b32.xlu1 %v924_v35, %s1090_s25  ;;  %v778_v34 = vrot.slane %v1203_v9, %v777_v31 }
 0x4bb   :  { %v512_v37 = vpop.f32.mrb[12].mxu0 }
 0x4bc   :  { %v880_v38 = vpop.f32.mrb[13].mxu0 }
 0x4bd   :  { %v515_v40 = vpop.f32.mrb[14].mxu0 }
 0x4be   :  { %v929_v41 = vpack.i.bf16 %v515_v40, %v512_v37  ;;  %v881_v42 = vpop.f32.mrb[15].mxu0 }
 0x4c0   :  { %930 = vrot.lane.b32.xlu0 %v929_v41, %s1091_s26 }
 0x4c3   :  { %v637_v43 = vpop.f32.mrb[16].mxu0 }
 0x4c4   :  { %v892_v44 = vpop.f32.mrb[17].mxu0 }
 0x4c5   :  { %v640_v45 = vpop.f32.mrb[18].mxu0 }
 0x4c6   :  { %v934_v46 = vpack.i.bf16 %v640_v45, %v637_v43  ;;  %v893_v47 = vpop.f32.mrb[19].mxu0 }
 0x4c8   :  { %935 = vrot.lane.b32.xlu1 %v934_v46, %s1092_s27 }
 0x52a   :  { %v926_v48 = vpop.permute.xlu1 %925 }
 0x52b   :  { %v928_v50 = vunpack.i.h.bf16 %v926_v48  ;;  %v927_v0 = vunpack.i.l.bf16 %v926_v48 }
 0x52d   :  { %v669_v54 = vsel %vm140_vm2, %v265_v29, %v928_v50  ;;  %v668_v55 = vsel %vm140_vm2, %v262_v27, %v927_v0 }
 0x532   :  { %v931_v49 = vpop.permute.xlu0 %930 }
 0x533   :  { %v933_v51 = vunpack.i.h.bf16 %v931_v49  ;;  %v932_v52 = vunpack.i.l.bf16 %v931_v49 }
 0x535   :  { %v671_v58 = vsel %vm198_vm3, %v669_v54, %v933_v51  ;;  %v670_v59 = vsel %vm198_vm3, %v668_v55, %v932_v52 }
 0x53a   :  { %v936_v53 = vpop.permute.xlu1 %935 }
 0x53b   :  { %v938_v56 = vunpack.i.h.bf16 %v936_v53  ;;  %v937_v57 = vunpack.i.l.bf16 %v936_v53 }
 0x53d   :  { %v674_v60 = vsel %vm672_vm4, %v671_v58, %v938_v56  ;;  %v673_v61 = vsel %vm672_vm4, %v670_v59, %v937_v57 }
 0x53e   :  { %v675_v62 = vpack.c.bf16 %v674_v60, %v673_v61 }
 0x540   :  { %899 = vmatmul.mubr.msk.bf16.vlgmr.msra.gmra.mrb[16].mxu1 %vm91_vm1, %v675_v62 }
 0x613   :  { %v733_v1 = vpop.f32.mrb[16].mxu1 }
 0x614   :  { %v734_v2 = vadd.f32 %v733_v1, %v683_v17  ;;  %v900_v5 = vpop.f32.mrb[17].mxu1 }
 0x615   :  { %v736_v6 = vpop.f32.mrb[18].mxu1 }
 0x616   :  { %v737_v8 = vadd.f32 %v736_v6, %v683_v17  ;;  %v901_v10 = vpop.f32.mrb[19].mxu1  ;;  %v740_v11 = vadd.f32 %v734_v2, %v1186_v3 }
 0x618   :  { %v742_v12 = vsel %vm91_vm1, %v740_v11, 0.0  ;;  %v741_v13 = vadd.f32 %v737_v8, %v1191_v4 }
 0x619   :  { %743 = vadd.xlane.f32.xlu0 %v742_v12 }
 0x61a   :  { %v745_v14 = vsel %vm91_vm1, %v741_v13, 0.0 }
 0x61b   :  { %746 = vadd.xlane.f32.xlu1 %v745_v14 }
 0x6a6   :  { %v744_v15 = vpop.xlane.xlu0 %743 }
 0x6a7   :  { %v749_v16 = vmul.f32 0.03125, %v744_v15 }
 0x6a8   :  { %v747_v18 = vpop.xlane.xlu1 %746 }
 0x6a9   :  { %v751_v19 = vsub.f32 %v740_v11, %v749_v16  ;;  %v750_v20 = vmul.f32 0.03125, %v747_v18 }
 0x6ab   :  { %v752_v21 = vsub.f32 %v741_v13, %v750_v20  ;;  %v753_v22 = vmul.f32 %v751_v19, %v751_v19 }
 0x6ad   :  { %v755_v23 = vsel %vm91_vm1, %v753_v22, 0.0  ;;  %v754_v24 = vmul.f32 %v752_v21, %v752_v21 }
 0x6ae   :  { %756 = vadd.xlane.f32.xlu0 %v755_v23 }
 0x6af   :  { %v758_v3 = vsel %vm91_vm1, %v754_v24, 0.0 }
 0x6b2   :  { %759 = vadd.xlane.f32.xlu0 %v758_v3 }
 0x73b   :  { %v757_v25 = vpop.xlane.xlu0 %756 }
 0x73c   :  { %v761_v4 = vmul.f32 0.03125, %v757_v25 }
 0x73e   :  { %v763_v26 = vadd.f32 1e-12, %v761_v4 }
 0x73f   :  { %v760_v27 = vpop.xlane.xlu0 %759 }
 0x740   :  { %975 = vrsqrt.f32 %v763_v26  ;;  %v762_v28 = vmul.f32 0.03125, %v760_v27 }
 0x742   :  { %v764_v29 = vadd.f32 1e-12, %v762_v28 }
 0x744   :  { %977 = vrsqrt.f32 %v764_v29 }
 0x74a   :  { %v976_v33 = vpop.eup %975 }
 0x74b   :  { %v767_v35 = vmul.f32 %v976_v33, %v751_v19 }
 0x74d   :  { %v773_v36 = vmul.f32 %v772_v32, %v767_v35 }
 0x74e   :  { %v978_v37 = vpop.eup %977 }
 0x74f   :  { %v768_v38 = vmul.f32 %v978_v37, %v752_v21  ;;  %v779_v39 = vadd.f32 %v778_v34, %v773_v36 }
 0x751   :  { %v774_v40 = vmul.f32 %v772_v32, %v768_v38  ;;  %781 = vst.msk [vmem:[#allocation8] sm:$0xff] %vm91_vm1, %v779_v39 }
 0x753   :  { %v780_v41 = vadd.f32 %v778_v34, %v774_v40 }
 0x755   :  { %782 = vst.msk [vmem:[#allocation8 + $0x8] sm:$0xff] %vm91_vm1, %v780_v41 }
 0x756   :  { %1056 = shalt.err (!%p1053_p0)
}
 0x757   :  { %s1057_s2 = scalar_lea.hbm %s1327_s6, 256 }
 0x758   :  { %p1058_p1 = scmp.ne.s32.totalorder %s1327_s6, %s1057_s2  ;;  %p1061_p2 = scmp.lt.u32.totalorder %s1057_s2, %s1327_s6 }
 0x75a   :  { %p1063_p3 = pnand %p1061_p2, %p1058_p1 }
 0x75c   :  { %1066 = shalt.err (!%p1063_p3)
}
 0x75d   :  { %s1094_s12 = smov 128  }
 0x75e   :  { %794 = dma.vmem_to_hbm [thread:$0]  %s789_s29, 256, %s1327_s6, [#allocation4], %s1094_s12, %s1094_s12, %s1090_s25  }
 0x75f   :  { %1071 = dma.done.wait [#allocation4], 256  }
 0x760   :  { %1072 = vsyncadd [#allocation4], 4294967040 }
 0x761   :  { %798 = vsyncpa [#allocation3], 1 }
 0x762   :  { %799 = vsyncpa [#allocation6], 1 }
 0x763   :  { %800 = vsyncpa [#allocation4], 1 }

</bundles_post_ra>
